<compile_context>
chip_gen: v7x
topology: tpu7x:2x2x1
jax: 0.10.0
libtpu: 0.0.40
codegen_flags: <defaults>
</compile_context>

<pallas_src>
import jax
import jax.numpy as jnp
from jax.experimental import pallas as pl
from jax.experimental.pallas import tpu as pltpu

# Logical (PyTorch) sizes.
INPUT_SIZE = 111
HIDDEN_SIZE = 500
TASK_OUTPUT_SIZES = [1] * 11
N_TASKS = len(TASK_OUTPUT_SIZES)

TASK_PAD = 16      # 11 -> 16 task columns (tiny; sliced off in the wrapper)
MAX_TM = 2048      # max rows per batch tile / grid step


def _round_up(x, m):
    return (x + m - 1) // m * m


def _choose_tm(batch):
    """Pick the batch tile size.

    - small batches: a single tile (rounded up to a sublane multiple of 8)
    - larger batches: at least 2 tiles (so the "parallel" axis can use both
      v7x TensorCores) and at most MAX_TM rows per tile, with tm ~= ceil(B/g)
      so there is no pathological over-padding.
    """
    b8 = _round_up(batch, 8)
    if b8 < 256:
        return b8
    n_tiles = max(2, pl.cdiv(b8, MAX_TM))
    return _round_up(pl.cdiv(b8, n_tiles), 8)


def _mtnn_kernel(x_ref, w1_ref, b1_ref, w2_ref, b2_ref, out_ref):
    # Shared layer in full f32 for parity with the PyTorch forward:
    # [tm, 111] @ [111, 500] (Mosaic pads K/N in registers).
    h = jnp.dot(x_ref[...], w1_ref[...], preferred_element_type=jnp.float32)
    h = jnp.maximum(h + b1_ref[...], 0.0)
    # All 11 task heads fused into one narrow matmul: [tm, 500] @ [500, 16].
    # bf16 inputs (native MXU path), f32 accumulation, f32 bias add + store.
    t = jnp.dot(h.astype(jnp.bfloat16), w2_ref[...],
                preferred_element_type=jnp.float32)
    out_ref[...] = t + b2_ref[...]


@jax.jit
def multitask_nn_fused(x, w_shared, b_shared, w_tasks, b_tasks):
    """Fused forward. Returns [B, N_TASKS] float32 (caller splits per task)."""
    B = x.shape[0]
    tm = _choose_tm(B)
    grid = (pl.cdiv(B, tm),)

    # Inputs at natural shapes / dtypes (no padded copy of x in HBM).
    x_f = x.astype(jnp.float32)
    w1 = w_shared.astype(jnp.float32)                       # (111, 500)
    b1 = b_shared.reshape(1, HIDDEN_SIZE).astype(jnp.float32)
    # Only the task dim is padded (11 -> 16); these are tiny resident weights.
    w2 = jnp.zeros((HIDDEN_SIZE, TASK_PAD), jnp.bfloat16)
    w2 = w2.at[:, :N_TASKS].set(w_tasks.astype(jnp.bfloat16))
    b2 = jnp.zeros((1, TASK_PAD), jnp.float32)
    b2 = b2.at[:, :N_TASKS].set(b_tasks.reshape(1, N_TASKS).astype(jnp.float32))

    flops = 2 * B * (INPUT_SIZE * HIDDEN_SIZE + HIDDEN_SIZE * TASK_PAD)
    bytes_accessed = (B * INPUT_SIZE * 4 + B * TASK_PAD * 4
                      + INPUT_SIZE * HIDDEN_SIZE * 4 + HIDDEN_SIZE * 4
                      + HIDDEN_SIZE * TASK_PAD * 2 + TASK_PAD * 4)

    out = pl.pallas_call(
        _mtnn_kernel,
        out_shape=jax.ShapeDtypeStruct((B, TASK_PAD), jnp.float32),
        grid=grid,
        in_specs=[
            # x tile per grid step; last dim = full dim (111), rows tiled.
            pl.BlockSpec((tm, INPUT_SIZE), lambda i: (i, 0)),
            # Weights / biases: full arrays, VMEM-resident across all steps.
            pl.BlockSpec((INPUT_SIZE, HIDDEN_SIZE), lambda i: (0, 0)),
            pl.BlockSpec((1, HIDDEN_SIZE), lambda i: (0, 0)),
            pl.BlockSpec((HIDDEN_SIZE, TASK_PAD), lambda i: (0, 0)),
            pl.BlockSpec((1, TASK_PAD), lambda i: (0, 0)),
        ],
        out_specs=pl.BlockSpec((tm, TASK_PAD), lambda i: (i, 0)),
        compiler_params=pltpu.CompilerParams(
            dimension_semantics=("parallel",),
            vmem_limit_bytes=32 * 1024 * 1024),
        cost_estimate=pl.CostEstimate(
            flops=flops, transcendentals=0, bytes_accessed=bytes_accessed),
    )(x_f, w1, b1, w2, b2)

    # Slice off the zero task-padding columns (rows were never over-allocated).
    return out[:, :N_TASKS]


def multitask_nn_forward(x, w_shared, b_shared, w_tasks, b_tasks):
    """Matches the PyTorch forward: returns a list of 11 [B, 1] arrays."""
    out = multitask_nn_fused(x, w_shared, b_shared, w_tasks, b_tasks)
    return [out[:, i:i + 1] for i in range(N_TASKS)]


def init_params(key):
    """Deterministic init mimicking PyTorch nn.Linear default U[-1/sqrt(fan_in), ...].

    Weights are stored pre-transposed vs. PyTorch:
      w_shared: [input_size, hidden], w_tasks: [hidden, n_tasks] (heads stacked).
    """
    k1, k2, k3, k4 = jax.random.split(key, 4)
    bound1 = 1.0 / (INPUT_SIZE ** 0.5)
    w_shared = jax.random.uniform(
        k1, (INPUT_SIZE, HIDDEN_SIZE), jnp.float32, -bound1, bound1)
    b_shared = jax.random.uniform(
        k2, (HIDDEN_SIZE,), jnp.float32, -bound1, bound1)
    bound2 = 1.0 / (HIDDEN_SIZE ** 0.5)
    w_tasks = jax.random.uniform(
        k3, (HIDDEN_SIZE, N_TASKS), jnp.float32, -bound2, bound2)
    b_tasks = jax.random.uniform(
        k4, (N_TASKS,), jnp.float32, -bound2, bound2)
    return w_shared, b_shared, w_tasks, b_tasks


def reference_forward(x, w_shared, b_shared, w_tasks, b_tasks):
    """Plain-JAX reference: f32 first layer, bf16-quantized h / W2 second layer
    (emulates the kernel's numerics; f32 accumulation throughout)."""
    h = jnp.maximum(
        jnp.dot(x, w_shared, precision=jax.lax.Precision.HIGHEST)
        + b_shared.reshape(1, -1), 0.0)
    hq = h.astype(jnp.bfloat16).astype(jnp.float32)
    w2q = w_tasks.astype(jnp.bfloat16).astype(jnp.float32)
    return (jnp.dot(hq, w2q, precision=jax.lax.Precision.HIGHEST)
            + b_tasks.reshape(1, -1))


if __name__ == "__main__":
    key = jax.random.PRNGKey(0)
    kx, kp, kx2 = jax.random.split(key, 3)
    params = init_params(kp)

    # Small batch (single tile).
    B = 8
    x = jax.random.normal(kx, (B, INPUT_SIZE), jnp.float32)
    task_outputs = multitask_nn_forward(x, *params)
    task_outputs = jax.block_until_ready(task_outputs)
    assert len(task_outputs) == N_TASKS
    assert all(t.shape == (B, 1) for t in task_outputs)
    out = jnp.concatenate(task_outputs, axis=1)
    ref = reference_forward(x, *params)
    err = float(jnp.max(jnp.abs(out - ref)))
    assert jnp.allclose(out, ref, atol=2e-2, rtol=2e-2), err

    # Mid-size batch: exercises grid >= 2 and a non-divisible last tile.
    B2 = 300
    x2 = jax.random.normal(kx2, (B2, INPUT_SIZE), jnp.float32)
    out2 = jnp.concatenate(multitask_nn_forward(x2, *params), axis=1)
    out2 = jax.block_until_ready(out2)
    assert out2.shape == (B2, N_TASKS)
    ref2 = reference_forward(x2, *params)
    err2 = float(jnp.max(jnp.abs(out2 - ref2)))
    assert jnp.allclose(out2, ref2, atol=2e-2, rtol=2e-2), err2

    print("KERNEL_OK")
</pallas_src>

<mosaic_0001>
module attributes {stable_mosaic.version = 11 : i64} {
  func.func @_mtnn_kernel(%arg0: i32, %arg1: memref<8x111xf32, #tpu.memory_space<vmem>>, %arg2: memref<111x500xf32, #tpu.memory_space<vmem>>, %arg3: memref<1x500xf32, #tpu.memory_space<vmem>>, %arg4: memref<500x16xbf16, #tpu.memory_space<vmem>>, %arg5: memref<1x16xf32, #tpu.memory_space<vmem>>, %arg6: memref<8x16xf32, #tpu.memory_space<vmem>>) attributes {dimension_semantics = [#tpu.dimension_semantics<parallel>], iteration_bounds = array<i64: 1>, scalar_prefetch = 0 : i64, scratch_operands = 0 : i64, tpu.core_type = #tpu.core_type<tc>, window_params = [{transform_indices = @transform_0, window_bounds = array<i64: 8, 111>}, {pipeline_mode = #tpu.pipeline_mode<synchronous>, transform_indices = @transform_1, window_bounds = array<i64: 111, 500>}, {pipeline_mode = #tpu.pipeline_mode<synchronous>, transform_indices = @transform_2, window_bounds = array<i64: 1, 500>}, {pipeline_mode = #tpu.pipeline_mode<synchronous>, transform_indices = @transform_3, window_bounds = array<i64: 500, 16>}, {pipeline_mode = #tpu.pipeline_mode<synchronous>, transform_indices = @transform_4, window_bounds = array<i64: 1, 16>}, {transform_indices = @transform_5, window_bounds = array<i64: 8, 16>}]} {
    %c0 = arith.constant 0 : index
    %c0_0 = arith.constant 0 : index
    %0 = vector.load %arg1[%c0, %c0_0] : memref<8x111xf32, #tpu.memory_space<vmem>>, vector<8x111xf32>
    %c0_1 = arith.constant 0 : index
    %c0_2 = arith.constant 0 : index
    %1 = vector.load %arg2[%c0_1, %c0_2] : memref<111x500xf32, #tpu.memory_space<vmem>>, vector<111x500xf32>
    %cst = arith.constant dense<0.000000e+00> : vector<8x500xf32>
    %2 = tpu.matmul %0, %1, %cst {dimension_numbers = #tpu.dot_dimension_numbers<[1], [0], [0], [1], [0, 0, 1, 1], [], []>} : vector<8x111xf32>, vector<111x500xf32>, vector<8x500xf32> -> vector<8x500xf32>
    %c0_3 = arith.constant 0 : index
    %c0_4 = arith.constant 0 : index
    %3 = vector.load %arg3[%c0_3, %c0_4] : memref<1x500xf32, #tpu.memory_space<vmem>>, vector<1x500xf32>
    %4 = vector.broadcast %3 : vector<1x500xf32> to vector<8x500xf32>
    %5 = arith.addf %2, %4 : vector<8x500xf32>
    %cst_5 = arith.constant 0.000000e+00 : f32
    %6 = vector.broadcast %cst_5 : f32 to vector<8x500xf32>
    %7 = arith.maximumf %5, %6 : vector<8x500xf32>
    %8 = arith.truncf %7 : vector<8x500xf32> to vector<8x500xbf16>
    %c0_6 = arith.constant 0 : index
    %c0_7 = arith.constant 0 : index
    %9 = vector.load %arg4[%c0_6, %c0_7] : memref<500x16xbf16, #tpu.memory_space<vmem>>, vector<500x16xbf16>
    %cst_8 = arith.constant dense<0.000000e+00> : vector<8x16xf32>
    %10 = tpu.matmul %8, %9, %cst_8 {dimension_numbers = #tpu.dot_dimension_numbers<[1], [0], [0], [1], [0, 0, 1, 1], [], []>} : vector<8x500xbf16>, vector<500x16xbf16>, vector<8x16xf32> -> vector<8x16xf32>
    %c0_9 = arith.constant 0 : index
    %c0_10 = arith.constant 0 : index
    %11 = vector.load %arg5[%c0_9, %c0_10] : memref<1x16xf32, #tpu.memory_space<vmem>>, vector<1x16xf32>
    %12 = vector.broadcast %11 : vector<1x16xf32> to vector<8x16xf32>
    %13 = arith.addf %10, %12 : vector<8x16xf32>
    %c0_11 = arith.constant 0 : index
    %c0_12 = arith.constant 0 : index
    %14 = vector.load %arg6[%c0_11, %c0_12] : memref<8x16xf32, #tpu.memory_space<vmem>>, vector<8x16xf32>
    tpu.vector_store %arg6[%c0_11, %c0_12], %13 {strides = array<i32>} : memref<8x16xf32, #tpu.memory_space<vmem>>, vector<8x16xf32>,
    return
  }
  func.func @transform_0(%arg0: i32) -> (i32, i32) {
    %c0_i32 = arith.constant 0 : i32
    %c0_i32_0 = arith.constant 0 : i32
    return %arg0, %c0_i32 : i32, i32
  }
  func.func @transform_1(%arg0: i32) -> (i32, i32) {
    %c0_i32 = arith.constant 0 : i32
    %c0_i32_0 = arith.constant 0 : i32
    %c0_i32_1 = arith.constant 0 : i32
    return %c0_i32, %c0_i32_0 : i32, i32
  }
  func.func @transform_2(%arg0: i32) -> (i32, i32) {
    %c0_i32 = arith.constant 0 : i32
    %c0_i32_0 = arith.constant 0 : i32
    %c0_i32_1 = arith.constant 0 : i32
    return %c0_i32, %c0_i32_0 : i32, i32
  }
  func.func @transform_3(%arg0: i32) -> (i32, i32) {
    %c0_i32 = arith.constant 0 : i32
    %c0_i32_0 = arith.constant 0 : i32
    %c0_i32_1 = arith.constant 0 : i32
    return %c0_i32, %c0_i32_0 : i32, i32
  }
  func.func @transform_4(%arg0: i32) -> (i32, i32) {
    %c0_i32 = arith.constant 0 : i32
    %c0_i32_0 = arith.constant 0 : i32
    %c0_i32_1 = arith.constant 0 : i32
    return %c0_i32, %c0_i32_0 : i32, i32
  }
  func.func @transform_5(%arg0: i32) -> (i32, i32) {
    %c0_i32 = arith.constant 0 : i32
    %c0_i32_0 = arith.constant 0 : i32
    return %arg0, %c0_i32 : i32, i32
  }
}

</mosaic_0001>

<bundles_post_ra>
// kernel: multitask_nn_fused.1
= control target key start
LH: loop header
LB: loop body
LE: loop exit
PB: predicated region body
PF: predicated region fallthrough
CT: control target
= control target key end

     0   :  { %v835_v7 = vmov 0.0   ;;  %vm105_vm0 = vcmask 1046528   ;;  %vm836_vm1 = vmmov 1   ;;  %vm101_vm3 = vcmask 908288   ;;  %s1166_s0 = inlined_call_operand.vmem [shape: f32[8,111], index: 0, kind: input, shape index: {}]   ;;  %s1167_s1 = inlined_call_operand.vmem [shape: f32[111,500], index: 1, kind: input, shape index: {}]   ;;  %s1168_s2 = inlined_call_operand.vmem [shape: f32[1,500], index: 2, kind: input, shape index: {}]   ;;  %s1169_s3 = inlined_call_operand.vmem [shape: bf16[500,16], index: 3, kind: input, shape index: {}]   ;;  %s1170_s4 = inlined_call_operand.vmem [shape: f32[1,16], index: 4, kind: input, shape index: {}]   ;;  %s1171_s5 = inlined_call_operand.hbm [shape: f32[8,16], index: 5, kind: output, shape index: {}]  }
   0x1   :  { %v24_v0 = vld [vmem:[%s1167_s1 + $0x8] sm:$0xff]  ;;  %v26_v2 = vld [vmem:[%s1167_s1 + $0x18] sm:$0xff]  ;;  %v23_v5 = vld [vmem:[%s1167_s1] sm:$0xff]  ;;  %182 = vmatprep.mubr.f32.mxu0 %v835_v7  ;;  %253 = vmatprep.mubr.f32.mxu1 %v835_v7 }
   0x2   :  { %v28_v1 = vld [vmem:[%s1167_s1 + $0x28] sm:$0xff]  ;;  %v30_v4 = vld [vmem:[%s1167_s1 + $0x38] sm:$0xff]  ;;  %v27_v6 = vld [vmem:[%s1167_s1 + $0x20] sm:$0xff] }
   0x3   :  { %v715_v3 = vpack.c.bf16 %v28_v1, %v24_v0  ;;  %v745_v8 = vpack.c.bf16 %v30_v4, %v26_v2  ;;  %v717_v9 = vpack.c.bf16 %v27_v6, %v23_v5  ;;  %v25_v10 = vld [vmem:[%s1167_s1 + $0x10] sm:$0xff]  ;;  %v32_v12 = vld [vmem:[%s1167_s1 + $0x48] sm:$0xff]  ;;  %v34_v15 = vld [vmem:[%s1167_s1 + $0x58] sm:$0xff] }
   0x4   :  { %v29_v11 = vld [vmem:[%s1167_s1 + $0x30] sm:$0xff]  ;;  %v36_v14 = vld [vmem:[%s1167_s1 + $0x68] sm:$0xff]  ;;  %v38_v16 = vld [vmem:[%s1167_s1 + $0x78] sm:$0xff] }
   0x5   :  { %716 = vmatprep.subr.bf16.mxu0 %v715_v3  ;;  %v747_v13 = vpack.c.bf16 %v29_v11, %v25_v10  ;;  %746 = vmatprep.subr.bf16.mxu1 %v745_v8  ;;  %v719_v17 = vpack.c.bf16 %v36_v14, %v32_v12  ;;  %v749_v18 = vpack.c.bf16 %v38_v16, %v34_v15  ;;  %v31_v19 = vld [vmem:[%s1167_s1 + $0x40] sm:$0xff]  ;;  %v33_v21 = vld [vmem:[%s1167_s1 + $0x50] sm:$0xff]  ;;  %v40_v24 = vld [vmem:[%s1167_s1 + $0x88] sm:$0xff] }
   0x6   :  { %718 = vmatpush1.bf16.msra.mxu0 %v717_v9  ;;  %v35_v20 = vld [vmem:[%s1167_s1 + $0x60] sm:$0xff]  ;;  %v37_v23 = vld [vmem:[%s1167_s1 + $0x70] sm:$0xff]  ;;  %v44_v25 = vld [vmem:[%s1167_s1 + $0xa8] sm:$0xff] }
   0x7   :  { %748 = vmatpush1.bf16.msra.mxu1 %v747_v13  ;;  %v721_v22 = vpack.c.bf16 %v35_v20, %v31_v19  ;;  %720 = vmatprep.subr.bf16.mxu0 %v719_v17  ;;  %v751_v26 = vpack.c.bf16 %v37_v23, %v33_v21  ;;  %v723_v27 = vpack.c.bf16 %v44_v25, %v40_v24  ;;  %v42_v28 = vld [vmem:[%s1167_s1 + $0x98] sm:$0xff]  ;;  %v39_v30 = vld [vmem:[%s1167_s1 + $0x80] sm:$0xff]  ;;  %v41_v33 = vld [vmem:[%s1167_s1 + $0x90] sm:$0xff] }
   0x8   :  { %750 = vmatprep.subr.bf16.mxu1 %v749_v18  ;;  %v46_v29 = vld [vmem:[%s1167_s1 + $0xb8] sm:$0xff]  ;;  %v43_v32 = vld [vmem:[%s1167_s1 + $0xa0] sm:$0xff]  ;;  %v45_v34 = vld [vmem:[%s1167_s1 + $0xb0] sm:$0xff] }
   0x9   :  { %v753_v31 = vpack.c.bf16 %v46_v29, %v42_v28  ;;  %v725_v35 = vpack.c.bf16 %v43_v32, %v39_v30  ;;  %v48_v36 = vld [vmem:[%s1167_s1 + $0xc8] sm:$0xff]  ;;  %v50_v38 = vld [vmem:[%s1167_s1 + $0xd8] sm:$0xff]  ;;  %v755_v39 = vpack.c.bf16 %v45_v34, %v41_v33  ;;  %v47_v42 = vld [vmem:[%s1167_s1 + $0xc0] sm:$0xff] }
   0xa   :  { %722 = vmatpush1.bf16.msra.mxu0 %v721_v22  ;;  %v52_v37 = vld [vmem:[%s1167_s1 + $0xe8] sm:$0xff]  ;;  %v54_v41 = vld [vmem:[%s1167_s1 + $0xf8] sm:$0xff]  ;;  %v51_v43 = vld [vmem:[%s1167_s1 + $0xe0] sm:$0xff] }
   0xb   :  { %752 = vmatpush1.bf16.msra.mxu1 %v751_v26  ;;  %724 = vmatprep.subr.bf16.mxu0 %v723_v27  ;;  %v727_v40 = vpack.c.bf16 %v52_v37, %v48_v36  ;;  %v757_v44 = vpack.c.bf16 %v54_v41, %v50_v38  ;;  %v49_v45 = vld [vmem:[%s1167_s1 + $0xd0] sm:$0xff]  ;;  %v56_v47 = vld [vmem:[%s1167_s1 + $0x108] sm:$0xff]  ;;  %v58_v49 = vld [vmem:[%s1167_s1 + $0x118] sm:$0xff]  ;;  %v729_v51 = vpack.c.bf16 %v51_v43, %v47_v42 }
   0xc   :  { %754 = vmatprep.subr.bf16.mxu1 %v753_v31  ;;  %v53_v46 = vld [vmem:[%s1167_s1 + $0xf0] sm:$0xff]  ;;  %v60_v48 = vld [vmem:[%s1167_s1 + $0x128] sm:$0xff]  ;;  %v62_v50 = vld [vmem:[%s1167_s1 + $0x138] sm:$0xff] }
   0xd   :  { %v759_v52 = vpack.c.bf16 %v53_v46, %v49_v45  ;;  %v731_v53 = vpack.c.bf16 %v60_v48, %v56_v47  ;;  %v55_v54 = vld [vmem:[%s1167_s1 + $0x100] sm:$0xff]  ;;  %v57_v56 = vld [vmem:[%s1167_s1 + $0x110] sm:$0xff]  ;;  %v761_v57 = vpack.c.bf16 %v62_v50, %v58_v49  ;;  %v64_v59 = vld [vmem:[%s1167_s1 + $0x148] sm:$0xff] }
   0xe   :  { %726 = vmatpush1.bf16.msra.mxu0 %v725_v35  ;;  %v59_v55 = vld [vmem:[%s1167_s1 + $0x120] sm:$0xff]  ;;  %v61_v58 = vld [vmem:[%s1167_s1 + $0x130] sm:$0xff]  ;;  %v68_v60 = vld [vmem:[%s1167_s1 + $0x168] sm:$0xff] }
   0xf   :  { %756 = vmatpush1.bf16.msra.mxu1 %v755_v39  ;;  %728 = vmatprep.subr.bf16.mxu0 %v727_v40  ;;  %v66_v61 = vld [vmem:[%s1167_s1 + $0x158] sm:$0xff]  ;;  %v733_v63 = vpack.c.bf16 %v59_v55, %v55_v54  ;;  %v63_v0 = vld [vmem:[%s1167_s1 + $0x140] sm:$0xff]  ;;  %v65_v2 = vld [vmem:[%s1167_s1 + $0x150] sm:$0xff]  ;;  %v763_v3 = vpack.c.bf16 %v61_v58, %v57_v56  ;;  %v735_v4 = vpack.c.bf16 %v68_v60, %v64_v59 }
  0x10   :  { %758 = vmatprep.subr.bf16.mxu1 %v757_v44  ;;  %v70_v62 = vld [vmem:[%s1167_s1 + $0x178] sm:$0xff]  ;;  %v67_v1 = vld [vmem:[%s1167_s1 + $0x160] sm:$0xff]  ;;  %v69_v5 = vld [vmem:[%s1167_s1 + $0x170] sm:$0xff] }
  0x11   :  { %v72_v6 = vld [vmem:[%s1167_s1 + $0x188] sm:$0xff]  ;;  %v765_v8 = vpack.c.bf16 %v70_v62, %v66_v61  ;;  %vm1019_vm2 = vmpackc.low %vm105_vm0, %vm836_vm1  ;;  %v74_v10 = vld [vmem:[%s1167_s1 + $0x198] sm:$0xff]  ;;  %v737_v13 = vpack.c.bf16 %v67_v1, %v63_v0  ;;  %v767_v15 = vpack.c.bf16 %v69_v5, %v65_v2 }
  0x12   :  { %730 = vmatpush1.bf16.msra.mxu0 %v729_v51  ;;  %v76_v7 = vld [vmem:[%s1167_s1 + $0x1a8] sm:$0x7f]  ;;  %v78_v11 = vld [vmem:[%s1167_s1 + $0x1b8] sm:$0x7f]  ;;  %v71_v12 = vld [vmem:[%s1167_s1 + $0x180] sm:$0xff] }
  0x13   :  { %760 = vmatpush1.bf16.msra.mxu1 %v759_v52  ;;  %732 = vmatprep.subr.bf16.mxu0 %v731_v53  ;;  %v75_v14 = vld [vmem:[%s1167_s1 + $0x1a0] sm:$0x7f]  ;;  %v739_v16 = vpack.c.bf16 %v76_v7, %v72_v6  ;;  %v73_v17 = vld [vmem:[%s1167_s1 + $0x190] sm:$0xff]  ;;  %v769_v18 = vpack.c.bf16 %v78_v11, %v74_v10  ;;  %v783_v27 = vld [vmem:[%s1169_s3 + $0x48] sm:$0xff]  }
  0x14   :  { %762 = vmatprep.subr.bf16.mxu1 %v761_v57  ;;  %v77_v19 = vld [vmem:[%s1167_s1 + $0x1b0] sm:$0x7f]  ;;  %v742_v20 = vpack.c.bf16 %v75_v14, %v71_v12  ;;  %v779_v21 = vld [vmem:[%s1169_s3 + $0x40] sm:$0xff]   ;;  %v784_v28 = vld [vmem:[%s1169_s3 + $0xc8] sm:$0xff]  }
  0x15   :  { %v772_v22 = vpack.c.bf16 %v77_v19, %v73_v17  ;;  %v780_v23 = vld [vmem:[%s1169_s3 + $0xc0] sm:$0xff]   ;;  %v785_v29 = vld [vmem:[%s1169_s3 + $0x8] sm:$0xff]   ;;  %v787_v31 = vld [vmem:[%s1169_s3 + $0x50] sm:$0xff]  }
  0x16   :  { %734 = vmatpush1.bf16.msra.mxu0 %v733_v63  ;;  %v22_v24 = vld [vmem:[%s1166_s0] sm:$0xff]  ;;  %v786_v30 = vld [vmem:[%s1169_s3 + $0x88] sm:$0xff]   ;;  %v788_v32 = vld [vmem:[%s1169_s3 + $0xd0] sm:$0xff]  }
  0x17   :  { %764 = vmatpush1.bf16.msra.mxu1 %v763_v3  ;;  %736 = vmatprep.subr.bf16.mxu0 %v735_v4  ;;  %v781_v25 = vld [vmem:[%s1169_s3] sm:$0xff]   ;;  %v789_v33 = vld [vmem:[%s1169_s3 + $0x10] sm:$0xff]   ;;  %v791_v35 = vld [vmem:[%s1169_s3 + $0x58] sm:$0xff]  }
  0x18   :  { %766 = vmatprep.subr.bf16.mxu1 %v765_v8  ;;  %v782_v26 = vld [vmem:[%s1169_s3 + $0x80] sm:$0xff]   ;;  %v790_v34 = vld [vmem:[%s1169_s3 + $0x90] sm:$0xff]   ;;  %v792_v36 = vld [vmem:[%s1169_s3 + $0xd8] sm:$0xff]  }
  0x19   :  { %v793_v37 = vld [vmem:[%s1169_s3 + $0x18] sm:$0xff]   ;;  %v795_v39 = vld [vmem:[%s1169_s3 + $0x60] sm:$0xff]   ;;  %v799_v43 = vld [vmem:[%s1169_s3 + $0x68] sm:$0xff]  }
  0x1a   :  { %738 = vmatpush1.bf16.msra.mxu0 %v737_v13  ;;  %v794_v38 = vld [vmem:[%s1169_s3 + $0x98] sm:$0xff]   ;;  %v796_v40 = vld [vmem:[%s1169_s3 + $0xe0] sm:$0xff]   ;;  %v800_v44 = vld [vmem:[%s1169_s3 + $0xe8] sm:$0xff]  }
  0x1b   :  { %768 = vmatpush1.bf16.msra.mxu1 %v767_v15  ;;  %741 = vmatprep.subr.msk.bf16.mxu0 %vm1019_vm2, %v739_v16  ;;  %v797_v41 = vld [vmem:[%s1169_s3 + $0x20] sm:$0xff]   ;;  %v801_v45 = vld [vmem:[%s1169_s3 + $0x28] sm:$0xff]  }
  0x1c   :  { %771 = vmatprep.subr.msk.bf16.mxu1 %vm1019_vm2, %v769_v18  ;;  %v798_v42 = vld [vmem:[%s1169_s3 + $0xa0] sm:$0xff]  }
  0x1e   :  { %744 = vmatpush1.bf16.msk.msra.mxu0 %vm1019_vm2, %v742_v20 }
  0x1f   :  { %774 = vmatpush1.bf16.msk.msra.mxu1 %vm1019_vm2, %v772_v22  ;;  %671 = vmatprep.subr.bf16.mxu0 %v779_v21 }
  0x20   :  { %693 = vmatprep.subr.bf16.mxu1 %v780_v23 }
  0x21   :  { %633 = vmatmul.mubr.msk.f32.vlgmr.msra.gmra.mrb[0].mxu0 %vm101_vm3, %v22_v24 }
  0x22   :  { %636 = vmatmul.mubr.msk.f32.vlgmr.msra.gmra.mrb[0].mxu1 %vm101_vm3, %v22_v24  ;;  %672 = vmatpush3.bf16.msra.mxu0 %v781_v25 }
  0x23   :  { %694 = vmatpush3.bf16.msra.mxu1 %v782_v26  ;;  %673 = vmatprep.subr.bf16.mxu0 %v783_v27 }
  0x24   :  { %695 = vmatprep.subr.bf16.mxu1 %v784_v28 }
  0x26   :  { %674 = vmatpush3.bf16.msra.mxu0 %v785_v29 }
  0x27   :  { %696 = vmatpush3.bf16.msra.mxu1 %v786_v30  ;;  %675 = vmatprep.subr.bf16.mxu0 %v787_v31 }
  0x28   :  { %697 = vmatprep.subr.bf16.mxu1 %v788_v32 }
  0x2a   :  { %676 = vmatpush3.bf16.msra.mxu0 %v789_v33 }
  0x2b   :  { %698 = vmatpush3.bf16.msra.mxu1 %v790_v34  ;;  %677 = vmatprep.subr.bf16.mxu0 %v791_v35 }
  0x2c   :  { %699 = vmatprep.subr.bf16.mxu1 %v792_v36 }
  0x2e   :  { %678 = vmatpush3.bf16.msra.mxu0 %v793_v37 }
  0x2f   :  { %700 = vmatpush3.bf16.msra.mxu1 %v794_v38  ;;  %679 = vmatprep.subr.bf16.mxu0 %v795_v39 }
  0x30   :  { %701 = vmatprep.subr.bf16.mxu1 %v796_v40 }
  0x32   :  { %680 = vmatpush3.bf16.msra.mxu0 %v797_v41 }
  0x33   :  { %10 = vsyncpa [#allocation3], 0  ;;  %702 = vmatpush3.bf16.msra.mxu1 %v798_v42  ;;  %681 = vmatprep.subr.bf16.mxu0 %v799_v43  ;;  %v802_v46 = vld [vmem:[%s1169_s3 + $0xa8] sm:$0xff]   ;;  %v803_v47 = vld [vmem:[%s1169_s3 + $0x70] sm:$0xff]   ;;  %vm531_vm4 = vcmask 1041408   ;;  %v81_v55 = vlaneseq  ;;  %vm527_vm5 = vcmask 949248  }
  0x34   :  { %703 = vmatprep.subr.bf16.mxu1 %v800_v44  ;;  %v804_v48 = vld [vmem:[%s1169_s3 + $0xf0] sm:$0xff]   ;;  %v807_v51 = vld [vmem:[%s1169_s3 + $0x78] sm:$0xff]   ;;  %v79_v58 = vld [vmem:[%s1168_s2] sm:$0xf]  ;;  %s837_s17 = smov [#allocation2]   ;;  %vm615_vm6 = vcmask 130048  }
  0x35   :  { %v805_v49 = vld [vmem:[%s1169_s3 + $0x30] sm:$0xff]   ;;  %v808_v52 = vld [vmem:[%s1169_s3 + $0xf8] ss:$0 sps:$4 sm:$0x33]   ;;  %v82_v56 = vshrl.u32 %v81_v55, 7  ;;  %s623_s18 = sshll.u32 %s837_s17, 4  ;;  %s624_s18 = int_to_ptr.vmem [resolvable:$true] %s623_s18 }
  0x36   :  { %682 = vmatpush3.bf16.msra.mxu0 %v801_v45  ;;  %v806_v50 = vld [vmem:[%s1169_s3 + $0xb0] sm:$0xff]   ;;  %v809_v53 = vld [vmem:[%s1169_s3 + $0x38] sm:$0xff]   ;;  %v637_v20 = vld [vmem:[%s1170_s4] ss:$0 sm:$0xff]  ;;  %s811_s19 = scalar_lea.vmem %s624_s18, 128  ;;  %p816_p1 = scmp.lt.s32.totalorder %s624_s18, %s624_s18 }
  0x37   :  { %704 = vmatpush3.bf16.msra.mxu1 %v802_v46  ;;  %683 = vmatprep.subr.bf16.mxu0 %v803_v47  ;;  %v810_v54 = vld [vmem:[%s1169_s3 + $0xb8] sm:$0xff]   ;;  %v83_v57 = vsub.s32 0, %v82_v56  ;;  %v91_v59 = vsub.s32 2, %v82_v56  ;;  %v87_v60 = vsub.s32 1, %v82_v56  ;;  %v95_v61 = vsub.s32 3, %v82_v56  ;;  %p812_p0 = scmp.ne.s32.totalorder %s624_s18, %s811_s19  ;;  %p817_p2 = scmp.lt.s32.totalorder %s811_s19, %s811_s19 }
  0x38   :  { %705 = vmatprep.subr.bf16.mxu1 %v804_v48 }
  0x39   :  { %v84_v62 = vrot.slane %v79_v58, %v83_v57  ;;  %v92_v63 = vrot.slane %v79_v58, %v91_v59  ;;  %v88_v0 = vrot.slane %v79_v58, %v87_v60  ;;  %v96_v1 = vrot.slane %v79_v58, %v95_v61  ;;  %p818_p3 = por %p817_p2, %p816_p1 }
  0x3a   :  { %684 = vmatpush3.bf16.msra.mxu0 %v805_v49 }
  0x3b   :  { %706 = vmatpush3.bf16.msra.mxu1 %v806_v50  ;;  %685 = vmatprep.subr.bf16.mxu0 %v807_v51  ;;  %p819_p4 = pnand %p818_p3, %p812_p0 }
  0x3c   :  { %775 = vmatprep.subr.msk.bf16.mxu1 %vm531_vm4, %v808_v52 }
  0x3e   :  { %686 = vmatpush3.bf16.msra.mxu0 %v809_v53 }
  0x3f   :  { %708 = vmatpush3.bf16.msra.mxu1 %v810_v54 }
  0xf4   :  { %v184_v2 = vpop.f32.mrb[0].mxu0 }
  0xf5   :  { %v185_v3 = vadd.f32 %v184_v2, %v84_v62  ;;  %v255_v4 = vpop.f32.mrb[0].mxu1  ;;  %v186_v5 = vpop.f32.mrb[1].mxu0 }
  0xf6   :  { %v256_v6 = vadd.f32 %v255_v4, %v92_v63  ;;  %v187_v7 = vadd.f32 %v186_v5, %v88_v0  ;;  %v257_v8 = vpop.f32.mrb[1].mxu1 }
  0xf7   :  { %v260_v9 = vmax.f32 %v185_v3, 0.0  ;;  %v258_v10 = vadd.f32 %v257_v8, %v96_v1 }
  0xf8   :  { %v262_v11 = vmax.f32 %v256_v6, 0.0  ;;  %v261_v12 = vmax.f32 %v187_v7, 0.0 }
  0xf9   :  { %v263_v13 = vmax.f32 %v258_v10, 0.0  ;;  %v264_v16 = vpack.c.bf16 %v260_v9, %v260_v9 }
  0xfa   :  { %v266_v14 = vpack.c.bf16 %v262_v11, %v262_v11  ;;  %v265_v15 = vpack.c.bf16 %v261_v12, %v261_v12 }
  0xfb   :  { %v267_v17 = vpack.c.bf16 %v263_v13, %v263_v13 }
  0xfc   :  { %567 = vmatprep.mubr.bf16.mxu0 %v265_v15 }
  0xfd   :  { %670 = vmatprep.mubr.msk.bf16.mxu1 %vm527_vm5, %v267_v17  ;;  %568 = vmatmul.mubr.bf16.vlgmr.msra.gmra.mrb[4].mxu0 %v264_v16 }
  0xfe   :  { %608 = vmatmul.mubr.bf16.vlgmr.msra.gmra.mrb[4].mxu1 %v266_v14 }
 0x1d0   :  { %v687_v18 = vpop.f32.mrb[4].mxu0 }
 0x1d1   :  { %v709_v19 = vpop.f32.mrb[4].mxu1  ;;  %v688_v21 = vpop.f32.mrb[5].mxu0 }
 0x1d2   :  { %v689_v22 = vadd.f32 %v688_v21, %v687_v18  ;;  %v710_v23 = vpop.f32.mrb[5].mxu1  ;;  %v690_v24 = vpop.f32.mrb[6].mxu0 }
 0x1d3   :  { %v711_v25 = vadd.f32 %v710_v23, %v709_v19  ;;  %v712_v26 = vpop.f32.mrb[6].mxu1  ;;  %v691_v27 = vpop.f32.mrb[7].mxu0 }
 0x1d4   :  { %v570_v28 = vadd.f32 %v689_v22, %v637_v20  ;;  %v713_v29 = vpop.f32.mrb[7].mxu1 }
 0x1d6   :  { %v610_v30 = vadd.f32 %v711_v25, %v570_v28 }
 0x1d8   :  { %616 = vst.msk [vmem:[#allocation2] sm:$0xff] %vm615_vm6, %v610_v30 }
 0x1d9   :  { %822 = shalt.err (!%p819_p4)
}
 0x1da   :  { %s823_s21 = scalar_lea.hbm %s1171_s5, 128 }
 0x1db   :  { %p824_p5 = scmp.ne.s32.totalorder %s1171_s5, %s823_s21  ;;  %p827_p6 = scmp.lt.u32.totalorder %s823_s21, %s1171_s5 }
 0x1dd   :  { %p829_p7 = pnand %p827_p6, %p824_p5 }
 0x1df   :  { %832 = shalt.err (!%p829_p7)
}
 0x1e0   :  { %626 = dma.vmem_to_hbm [thread:$0]  %s624_s18, 128, %s1171_s5, [#allocation3]  }
 0x1e1   :  { %833 = dma.done.wait [#allocation3], 128  }
 0x1e2   :  { %834 = vsyncadd [#allocation3], 4294967168 }
 0x1e3   :  { %630 = vsyncpa [#allocation3], 1 }

</bundles_post_ra>
